<compile_context>
chip_gen: v7x
topology: tpu7x:2x2x1
jax: 0.10.0
libtpu: 0.0.40
codegen_flags: <defaults>
</compile_context>

<pallas_src>
import functools

import jax
import jax.numpy as jnp
from jax.experimental import pallas as pl
from jax.experimental.pallas import tpu as pltpu


def _parabolic_weights(scales, ks):
    """Mirror of SemiPool2dParabolic._compute_kernel (max-plus semifield)."""
    # torch.linspace(-ks // 2 + 1, ks // 2, ks) with Python floor-div semantics
    z = jnp.linspace(float((-ks) // 2 + 1), float(ks // 2), ks, dtype=jnp.float32)
    base = z[:, None] ** 2 + z[None, :] ** 2
    base = -base  # aggregation.__name__ == 'maxvalues'  ->  negate parabola
    # scales: (C,) learnable;  result: (C, ks, ks)
    return base[None, :, :] / (4.0 * jnp.abs(scales)[:, None, None])


def _out_and_pad(H, W, M, N, s, padding, ceil_mode):
    """Output size + total padding, exactly as in SemiPool2d._semi_pool."""
    if padding == "valid":
        H_out = (H - M + (s - 1 if ceil_mode else 0)) // s + 1
        W_out = (W - N + (s - 1 if ceil_mode else 0)) // s + 1
    elif padding == "same":
        H_out = -(H // -s)
        W_out = -(W // -s)
    else:
        raise ValueError('Padding must be either "valid" or "same"')
    pad_h = max((H_out - 1) * s + M - H, 0)
    pad_w = max((W_out - 1) * s + N - W, 0)
    return H_out, W_out, pad_h, pad_w


def _maxplus_pool_kernel(w_ref, x_ref, o_ref, *, M, N, s, H_out, W_out):
    """Strided max-plus (dilation) pooling for one (batch, channel) image.

    w_ref: (C*M*N,) f32 in SMEM   per-(channel, tap) parabolic weights.
    x_ref: (1, s*s, Hq, Wq)       phase-decomposed padded input tile (VMEM).
    o_ref: (1, 1, H_out, W_out)   pooled output tile (VMEM), W_out on lanes.
    """
    c = pl.program_id(1)                                   # channel index
    acc = jnp.full((H_out, W_out), -jnp.inf, dtype=jnp.float32)   # aggregation id
    for m in range(M):
        hq0, hp = m // s, m % s
        for n in range(N):
            wq0, wp = n // s, n % s
            ph = hp * s + wp
            # Padded row i*s + m lives at (phase hp, row hq0 + i); same for cols,
            # so the strided window is a contiguous (H_out, W_out) load.
            win = x_ref[0, ph, pl.ds(hq0, H_out), pl.ds(wq0, W_out)]
            wv = w_ref[c * (M * N) + m * N + n]            # scalar -> lane broadcast
            # weighting = add, aggregation = max
            acc = jnp.maximum(acc, win + wv)
    o_ref[0, 0] = acc.astype(o_ref.dtype)


def semi_pool2d_parabolic(x_nchw, scales, *, kernel_size, stride,
                          padding="valid", ceil_mode=False):
    """Forward pass of SemiPool2dParabolic (max-plus). x_nchw: (B, C, H, W)."""
    B, C, H, W = x_nchw.shape
    M = N = kernel_size
    s = stride

    H_out, W_out, pad_h, pad_w = _out_and_pad(H, W, M, N, s, padding, ceil_mode)
    p_t, p_l = pad_h // 2, pad_w // 2

    # Padded extents actually touched by the kernel; round up to a multiple of s
    # so the phase (space-to-depth) reshape is exact.  Extra -inf rows/cols are
    # never read.
    Hp_needed = (H_out - 1) * s + M
    Wp_needed = (W_out - 1) * s + N
    Hp = s * (-(-max(Hp_needed, p_t + H) // s))
    Wp = s * (-(-max(Wp_needed, p_l + W) // s))
    Hq, Wq = Hp // s, Wp // s

    # NOTE: scales == 0 (as in the PyTorch module) would give inf weights and NaNs.
    xf = x_nchw.astype(jnp.float32)
    xp = jnp.pad(xf, ((0, 0), (0, 0), (p_t, Hp - p_t - H), (p_l, Wp - p_l - W)),
                 constant_values=-jnp.inf)
    # Phase decomposition: padded (B, C, Hp, Wp) -> (B, C*s*s, Hq, Wq) with
    # phase = (row % s) * s + (col % s).  One fused XLA copy; identity when s == 1.
    xph = (xp.reshape(B, C, Hq, s, Wq, s)
             .transpose(0, 1, 3, 5, 2, 4)
             .reshape(B, C * s * s, Hq, Wq))

    # Per-(channel, tap) scalar weights, flat 1D for compact SMEM layout.
    w_taps = _parabolic_weights(scales, kernel_size).astype(jnp.float32).reshape(-1)

    kernel = functools.partial(_maxplus_pool_kernel,
                               M=M, N=N, s=s, H_out=H_out, W_out=W_out)

    cost = pl.CostEstimate(
        flops=2 * B * C * H_out * W_out * M * N,           # one add + one max per tap
        transcendentals=0,
        bytes_accessed=4 * (B * C * Hp * Wp + B * C * H_out * W_out + C * M * N))

    out = pl.pallas_call(
        kernel,
        out_shape=jax.ShapeDtypeStruct((B, C, H_out, W_out), x_nchw.dtype),
        grid_spec=pltpu.PrefetchScalarGridSpec(
            num_scalar_prefetch=0,
            grid=(B, C),
            in_specs=[
                pl.BlockSpec(memory_space=pltpu.MemorySpace.SMEM),     # weights
                pl.BlockSpec((1, s * s, Hq, Wq), lambda b, c: (b, c, 0, 0)),
            ],
            out_specs=pl.BlockSpec((1, 1, H_out, W_out), lambda b, c: (b, c, 0, 0)),
        ),
        compiler_params=pltpu.CompilerParams(
            dimension_semantics=("parallel", "parallel"),
            vmem_limit_bytes=32 * 1024 * 1024),
        cost_estimate=cost,
    )(w_taps, xph)
    return out


def _reference(x_nchw, scales, kernel_size, stride, padding="valid", ceil_mode=False):
    """Pure-JAX mirror of the PyTorch unfold-based implementation (max-plus)."""
    B, C, H, W = x_nchw.shape
    M = N = kernel_size
    s = stride
    w = _parabolic_weights(scales, kernel_size)                        # (C, M, N)
    H_out, W_out, pad_h, pad_w = _out_and_pad(H, W, M, N, s, padding, ceil_mode)
    p_t, p_l = pad_h // 2, pad_w // 2
    xp = jnp.pad(x_nchw.astype(jnp.float32),
                 ((0, 0), (0, 0), (p_t, pad_h - p_t), (p_l, pad_w - p_l)),
                 constant_values=-jnp.inf)
    res = jnp.full((B, C, H_out, W_out), -jnp.inf, jnp.float32)
    for m in range(M):
        for n in range(N):
            win = xp[:, :, m:m + (H_out - 1) * s + 1:s, n:n + (W_out - 1) * s + 1:s]
            res = jnp.maximum(res, win + w[None, :, m:m + 1, n:n + 1])
    return res


if __name__ == "__main__":
    key = jax.random.PRNGKey(0)
    B, C, H, W = 2, 4, 16, 16
    ks = 3

    x = jax.random.normal(key, (B, C, H, W), dtype=jnp.float32)
    # Module init is torch.full((c_in,), initial_scale); perturb deterministically
    # per channel so the per-channel weighting is actually exercised.
    initial_scale = 1.0
    scales = initial_scale * (1.0 + 0.25 * jnp.arange(C, dtype=jnp.float32))

    # Config 1: 'same' padding, stride 2
    fwd_same = jax.jit(functools.partial(
        semi_pool2d_parabolic, kernel_size=ks, stride=2, padding="same"))
    out1 = jax.block_until_ready(fwd_same(x, scales))
    ref1 = _reference(x, scales, ks, 2, padding="same")
    assert out1.shape == (B, C, 8, 8), out1.shape
    assert jnp.allclose(out1, ref1, atol=1e-5), float(jnp.max(jnp.abs(out1 - ref1)))

    # Config 2: 'valid' padding, stride 1
    fwd_valid = jax.jit(functools.partial(
        semi_pool2d_parabolic, kernel_size=ks, stride=1, padding="valid"))
    out2 = jax.block_until_ready(fwd_valid(x, scales))
    ref2 = _reference(x, scales, ks, 1, padding="valid")
    assert out2.shape == (B, C, 14, 14), out2.shape
    assert jnp.allclose(out2, ref2, atol=1e-5), float(jnp.max(jnp.abs(out2 - ref2)))

    print("KERNEL_OK")
</pallas_src>

<mosaic_0001>
module attributes {stable_mosaic.version = 11 : i64} {
  func.func @_maxplus_pool_kernel(%arg0: i32, %arg1: i32, %arg2: memref<36xf32, #tpu.memory_space<smem>>, %arg3: memref<1x4x9x9xf32, #tpu.memory_space<vmem>>, %arg4: memref<1x1x8x8xf32, #tpu.memory_space<vmem>>) attributes {dimension_semantics = [#tpu.dimension_semantics<parallel>, #tpu.dimension_semantics<parallel>], iteration_bounds = array<i64: 2, 4>, scalar_prefetch = 0 : i64, scratch_operands = 0 : i64, tpu.core_type = #tpu.core_type<tc>, window_params = [{transform_indices = @transform_0, window_bounds = array<i64: 36>}, {transform_indices = @transform_1, window_bounds = array<i64: 1, 4, 9, 9>}, {transform_indices = @transform_2, window_bounds = array<i64: 1, 1, 8, 8>}]} {
    %cst = arith.constant 0xFF800000 : f32
    %0 = vector.broadcast %cst : f32 to vector<8x8xf32>
    %c0 = arith.constant 0 : index
    %c0_0 = arith.constant 0 : index
    %c0_1 = arith.constant 0 : index
    %c0_2 = arith.constant 0 : index
    %1 = vector.load %arg3[%c0, %c0_0, %c0_1, %c0_2] : memref<1x4x9x9xf32, #tpu.memory_space<vmem>>, vector<1x1x8x8xf32>
    %2 = vector.shape_cast %1 : vector<1x1x8x8xf32> to vector<8x8xf32>
    %c9_i32 = arith.constant 9 : i32
    %3 = arith.muli %arg1, %c9_i32 : i32
    %c0_i32 = arith.constant 0 : i32
    %4 = arith.addi %3, %c0_i32 : i32
    %c0_i32_3 = arith.constant 0 : i32
    %5 = arith.addi %4, %c0_i32_3 : i32
    %6 = arith.index_cast %5 : i32 to index
    %7 = memref.load %arg2[%6] : memref<36xf32, #tpu.memory_space<smem>>
    %8 = vector.broadcast %7 : f32 to vector<8x8xf32>
    %9 = arith.addf %2, %8 : vector<8x8xf32>
    %10 = arith.maximumf %0, %9 : vector<8x8xf32>
    %c0_4 = arith.constant 0 : index
    %c1 = arith.constant 1 : index
    %c0_5 = arith.constant 0 : index
    %c0_6 = arith.constant 0 : index
    %11 = vector.load %arg3[%c0_4, %c1, %c0_5, %c0_6] : memref<1x4x9x9xf32, #tpu.memory_space<vmem>>, vector<1x1x8x8xf32>
    %12 = vector.shape_cast %11 : vector<1x1x8x8xf32> to vector<8x8xf32>
    %c9_i32_7 = arith.constant 9 : i32
    %13 = arith.muli %arg1, %c9_i32_7 : i32
    %c0_i32_8 = arith.constant 0 : i32
    %14 = arith.addi %13, %c0_i32_8 : i32
    %c1_i32 = arith.constant 1 : i32
    %15 = arith.addi %14, %c1_i32 : i32
    %16 = arith.index_cast %15 : i32 to index
    %17 = memref.load %arg2[%16] : memref<36xf32, #tpu.memory_space<smem>>
    %18 = vector.broadcast %17 : f32 to vector<8x8xf32>
    %19 = arith.addf %12, %18 : vector<8x8xf32>
    %20 = arith.maximumf %10, %19 : vector<8x8xf32>
    %c0_9 = arith.constant 0 : index
    %c0_10 = arith.constant 0 : index
    %c0_11 = arith.constant 0 : index
    %c1_12 = arith.constant 1 : index
    %21 = vector.load %arg3[%c0_9, %c0_10, %c0_11, %c1_12] : memref<1x4x9x9xf32, #tpu.memory_space<vmem>>, vector<1x1x8x8xf32>
    %22 = vector.shape_cast %21 : vector<1x1x8x8xf32> to vector<8x8xf32>
    %c9_i32_13 = arith.constant 9 : i32
    %23 = arith.muli %arg1, %c9_i32_13 : i32
    %c0_i32_14 = arith.constant 0 : i32
    %24 = arith.addi %23, %c0_i32_14 : i32
    %c2_i32 = arith.constant 2 : i32
    %25 = arith.addi %24, %c2_i32 : i32
    %26 = arith.index_cast %25 : i32 to index
    %27 = memref.load %arg2[%26] : memref<36xf32, #tpu.memory_space<smem>>
    %28 = vector.broadcast %27 : f32 to vector<8x8xf32>
    %29 = arith.addf %22, %28 : vector<8x8xf32>
    %30 = arith.maximumf %20, %29 : vector<8x8xf32>
    %c0_15 = arith.constant 0 : index
    %c2 = arith.constant 2 : index
    %c0_16 = arith.constant 0 : index
    %c0_17 = arith.constant 0 : index
    %31 = vector.load %arg3[%c0_15, %c2, %c0_16, %c0_17] : memref<1x4x9x9xf32, #tpu.memory_space<vmem>>, vector<1x1x8x8xf32>
    %32 = vector.shape_cast %31 : vector<1x1x8x8xf32> to vector<8x8xf32>
    %c9_i32_18 = arith.constant 9 : i32
    %33 = arith.muli %arg1, %c9_i32_18 : i32
    %c3_i32 = arith.constant 3 : i32
    %34 = arith.addi %33, %c3_i32 : i32
    %c0_i32_19 = arith.constant 0 : i32
    %35 = arith.addi %34, %c0_i32_19 : i32
    %36 = arith.index_cast %35 : i32 to index
    %37 = memref.load %arg2[%36] : memref<36xf32, #tpu.memory_space<smem>>
    %38 = vector.broadcast %37 : f32 to vector<8x8xf32>
    %39 = arith.addf %32, %38 : vector<8x8xf32>
    %40 = arith.maximumf %30, %39 : vector<8x8xf32>
    %c0_20 = arith.constant 0 : index
    %c3 = arith.constant 3 : index
    %c0_21 = arith.constant 0 : index
    %c0_22 = arith.constant 0 : index
    %41 = vector.load %arg3[%c0_20, %c3, %c0_21, %c0_22] : memref<1x4x9x9xf32, #tpu.memory_space<vmem>>, vector<1x1x8x8xf32>
    %42 = vector.shape_cast %41 : vector<1x1x8x8xf32> to vector<8x8xf32>
    %c9_i32_23 = arith.constant 9 : i32
    %43 = arith.muli %arg1, %c9_i32_23 : i32
    %c3_i32_24 = arith.constant 3 : i32
    %44 = arith.addi %43, %c3_i32_24 : i32
    %c1_i32_25 = arith.constant 1 : i32
    %45 = arith.addi %44, %c1_i32_25 : i32
    %46 = arith.index_cast %45 : i32 to index
    %47 = memref.load %arg2[%46] : memref<36xf32, #tpu.memory_space<smem>>
    %48 = vector.broadcast %47 : f32 to vector<8x8xf32>
    %49 = arith.addf %42, %48 : vector<8x8xf32>
    %50 = arith.maximumf %40, %49 : vector<8x8xf32>
    %c0_26 = arith.constant 0 : index
    %c2_27 = arith.constant 2 : index
    %c0_28 = arith.constant 0 : index
    %c1_29 = arith.constant 1 : index
    %51 = vector.load %arg3[%c0_26, %c2_27, %c0_28, %c1_29] : memref<1x4x9x9xf32, #tpu.memory_space<vmem>>, vector<1x1x8x8xf32>
    %52 = vector.shape_cast %51 : vector<1x1x8x8xf32> to vector<8x8xf32>
    %c9_i32_30 = arith.constant 9 : i32
    %53 = arith.muli %arg1, %c9_i32_30 : i32
    %c3_i32_31 = arith.constant 3 : i32
    %54 = arith.addi %53, %c3_i32_31 : i32
    %c2_i32_32 = arith.constant 2 : i32
    %55 = arith.addi %54, %c2_i32_32 : i32
    %56 = arith.index_cast %55 : i32 to index
    %57 = memref.load %arg2[%56] : memref<36xf32, #tpu.memory_space<smem>>
    %58 = vector.broadcast %57 : f32 to vector<8x8xf32>
    %59 = arith.addf %52, %58 : vector<8x8xf32>
    %60 = arith.maximumf %50, %59 : vector<8x8xf32>
    %c0_33 = arith.constant 0 : index
    %c0_34 = arith.constant 0 : index
    %c1_35 = arith.constant 1 : index
    %c0_36 = arith.constant 0 : index
    %61 = vector.load %arg3[%c0_33, %c0_34, %c1_35, %c0_36] : memref<1x4x9x9xf32, #tpu.memory_space<vmem>>, vector<1x1x8x8xf32>
    %62 = vector.shape_cast %61 : vector<1x1x8x8xf32> to vector<8x8xf32>
    %c9_i32_37 = arith.constant 9 : i32
    %63 = arith.muli %arg1, %c9_i32_37 : i32
    %c6_i32 = arith.constant 6 : i32
    %64 = arith.addi %63, %c6_i32 : i32
    %c0_i32_38 = arith.constant 0 : i32
    %65 = arith.addi %64, %c0_i32_38 : i32
    %66 = arith.index_cast %65 : i32 to index
    %67 = memref.load %arg2[%66] : memref<36xf32, #tpu.memory_space<smem>>
    %68 = vector.broadcast %67 : f32 to vector<8x8xf32>
    %69 = arith.addf %62, %68 : vector<8x8xf32>
    %70 = arith.maximumf %60, %69 : vector<8x8xf32>
    %c0_39 = arith.constant 0 : index
    %c1_40 = arith.constant 1 : index
    %c1_41 = arith.constant 1 : index
    %c0_42 = arith.constant 0 : index
    %71 = vector.load %arg3[%c0_39, %c1_40, %c1_41, %c0_42] : memref<1x4x9x9xf32, #tpu.memory_space<vmem>>, vector<1x1x8x8xf32>
    %72 = vector.shape_cast %71 : vector<1x1x8x8xf32> to vector<8x8xf32>
    %c9_i32_43 = arith.constant 9 : i32
    %73 = arith.muli %arg1, %c9_i32_43 : i32
    %c6_i32_44 = arith.constant 6 : i32
    %74 = arith.addi %73, %c6_i32_44 : i32
    %c1_i32_45 = arith.constant 1 : i32
    %75 = arith.addi %74, %c1_i32_45 : i32
    %76 = arith.index_cast %75 : i32 to index
    %77 = memref.load %arg2[%76] : memref<36xf32, #tpu.memory_space<smem>>
    %78 = vector.broadcast %77 : f32 to vector<8x8xf32>
    %79 = arith.addf %72, %78 : vector<8x8xf32>
    %80 = arith.maximumf %70, %79 : vector<8x8xf32>
    %c0_46 = arith.constant 0 : index
    %c0_47 = arith.constant 0 : index
    %c1_48 = arith.constant 1 : index
    %c1_49 = arith.constant 1 : index
    %81 = vector.load %arg3[%c0_46, %c0_47, %c1_48, %c1_49] : memref<1x4x9x9xf32, #tpu.memory_space<vmem>>, vector<1x1x8x8xf32>
    %82 = vector.shape_cast %81 : vector<1x1x8x8xf32> to vector<8x8xf32>
    %c9_i32_50 = arith.constant 9 : i32
    %83 = arith.muli %arg1, %c9_i32_50 : i32
    %c6_i32_51 = arith.constant 6 : i32
    %84 = arith.addi %83, %c6_i32_51 : i32
    %c2_i32_52 = arith.constant 2 : i32
    %85 = arith.addi %84, %c2_i32_52 : i32
    %86 = arith.index_cast %85 : i32 to index
    %87 = memref.load %arg2[%86] : memref<36xf32, #tpu.memory_space<smem>>
    %88 = vector.broadcast %87 : f32 to vector<8x8xf32>
    %89 = arith.addf %82, %88 : vector<8x8xf32>
    %90 = arith.maximumf %80, %89 : vector<8x8xf32>
    %c0_53 = arith.constant 0 : index
    %c0_54 = arith.constant 0 : index
    %c0_55 = arith.constant 0 : index
    %c0_56 = arith.constant 0 : index
    %91 = vector.load %arg4[%c0_53, %c0_54, %c0_55, %c0_56] : memref<1x1x8x8xf32, #tpu.memory_space<vmem>>, vector<1x1x8x8xf32>
    %92 = vector.shape_cast %91 : vector<1x1x8x8xf32> to vector<8x8xf32>
    %93 = vector.shape_cast %90 : vector<8x8xf32> to vector<1x1x8x8xf32>
    tpu.vector_store %arg4[%c0_53, %c0_54, %c0_55, %c0_56], %93 {strides = array<i32>} : memref<1x1x8x8xf32, #tpu.memory_space<vmem>>, vector<1x1x8x8xf32>,
    return
  }
  func.func @transform_0(%arg0: i32, %arg1: i32) -> i32 {
    %c0_i32 = arith.constant 0 : i32
    %c0_i32_0 = arith.constant 0 : i32
    return %c0_i32 : i32
  }
  func.func @transform_1(%arg0: i32, %arg1: i32) -> (i32, i32, i32, i32) {
    %c0_i32 = arith.constant 0 : i32
    %c0_i32_0 = arith.constant 0 : i32
    %c0_i32_1 = arith.constant 0 : i32
    return %arg0, %arg1, %c0_i32, %c0_i32_0 : i32, i32, i32, i32
  }
  func.func @transform_2(%arg0: i32, %arg1: i32) -> (i32, i32, i32, i32) {
    %c0_i32 = arith.constant 0 : i32
    %c0_i32_0 = arith.constant 0 : i32
    %c0_i32_1 = arith.constant 0 : i32
    return %arg0, %arg1, %c0_i32, %c0_i32_0 : i32, i32, i32, i32
  }
}

</mosaic_0001>

<bundles_post_ra>
// kernel: semi_pool2d_parabolic.1
= control target key start
LH: loop header
LB: loop body
LE: loop exit
PB: predicated region body
PF: predicated region fallthrough
CT: control target
= control target key end

     0   :  { %s779_s0 = inlined_call_operand.vmem [shape: f32[36], index: 0, kind: input, shape index: {}]   ;;  %s780_s1 = inlined_call_operand.vmem [shape: f32[2,16,9,9], index: 1, kind: input, shape index: {}]   ;;  %s781_s2 = inlined_call_operand.hbm [shape: f32[2,4,8,8], index: 2, kind: output, shape index: {}]  }
   0x1   :  { %782 = sst [smem:[#allocation8_spill]] %s779_s0 }
   0x2   :  { %783 = sst [smem:[#allocation9_spill]] %s780_s1 }
   0x3   :  { %7 = vsyncpa [#allocation4], 0 }
   0x4   :  { %8 = vsyncpa [#allocation3], 0 }
   0x5   :  { %10 = vsyncpa [#allocation3 + $0x1], 0  ;;  %s602_s9 = smov 0   ;;  %s604_s10 = smov 0  }
   0x6   :  { %s606_s11 = smov 0   ;;  %s608_s12 = smov 0  }
   0x7   :  { %s610_s13 = smov 0   ;;  %s612_s14 = smov 0  }
   0x8   :  { %s614_s15 = smov 0   ;;  %s616_s16 = smov 0  }
   0x9 LB: > { %s365_s17 = sadd.s32 4294967295, %s582_s16   ;;  %s366_s18 = sadd.s32 4294967294, %s582_s16   ;;  %s582_s16 = sphi %s616_s16, %s16_s16   ;;  %s578_s15 = sphi %s614_s15, %s797_s15   ;;  %s574_s14 = sphi %s612_s14, %s796_s14   ;;  %s570_s13 = sphi %s610_s13, %s795_s13   ;;  %s566_s12 = sphi %s608_s12, %s794_s12   ;;  %s562_s11 = sphi %s606_s11, %s793_s11   ;;  %s558_s10 = sphi %s604_s10, %s792_s10   ;;  %s554_s9 = sphi %s602_s9, %s791_s9  }
   0xa   : > { %s25_s19 = sadd.s32 1, %s574_s14  ;;  %s28_s20 = sadd.s32 1, %s578_s15 }
   0xb   : > { %p26_p0 = scmp.ge.s32.totalorder %s25_s19, 4  ;;  %s86_s21 = sadd.s32 1, %s562_s11 }
   0xc   : > { %p96_p1 = scmp.ne.s32.totalorder %s562_s11, %s558_s10  ;;  %p97_p2 = scmp.eq.s32.totalorder %s365_s17, 7 }
   0xd   : > { %s799_s19 = smov (%p26_p0, %s25_s19), 0  ;;  %s801_s20 = smov (!%p26_p0, %s28_s20), %s578_s15 }
   0xe   : > { %s82_s22 = ssub.s32 %s574_s14, %s799_s19  ;;  %p654_p3 = por %p97_p2, %p96_p1 }
   0xf   : > { %p30_p4 = scmp.ge.s32.totalorder %s801_s20, 2  ;;  %p102_p5 = scmp.ne.s32.totalorder %s558_s10, %s554_s9 }
  0x10   : > { %p103_p6 = scmp.eq.s32.totalorder %s366_s18, 7  ;;  %p367_p7 = scmp.ge.s32.totalorder %s582_s16, 1 }
  0x11   : > { %s803_s20 = smov (%p30_p4, %s801_s20), 0  ;;  %p110_p9 = scmp.lt.s32.totalorder %s582_s16, 9 }
  0x12   : > { %p663_p8 = por %p103_p6, %p102_p5  ;;  %s81_s25 = ssub.s32 %s578_s15, %s803_s20 }
  0x13   : > { %s83_s26 = sor.u32 %s82_s22, %s81_s25  ;;  %p670_p10 = pnand %p367_p7, %p110_p9 }
  0x14   : > { %s785_s24 = scalar_select %p663_p8, 1, 0 }
  0x15   : > { %p84_p11 = scmp.eq.s32.totalorder %s83_s26, 0  ;;  %p674_p12 = scmp.eq.s32.totalorder %s365_s17, 0 }
  0x16   : > { %p392_p13 = pneg %p670_p10  ;;  %s788_s0 = sld [smem:[#allocation8_spill]] }
  0x17   : > { %s684_s4 = scalar_select %p84_p11, %s562_s11, %s86_s21  }
  0x18   : > { %p393_p0 = pnand %p674_p12, %p392_p13 }
  0x1a   : > { %p471_p2 = pneg %p393_p0 }
  0x1c   : > { %s123_s3 = sshll.u32 %s788_s0, 4  ;;  %s124_s3 = int_to_ptr.vmem [resolvable:$true] %s123_s3 }
  0x1d   : > { %s469_s5 = scalar_lea.vmem %s124_s3, 16  ;;  %p477_p6 = scmp.lt.s32.totalorder %s124_s3, %s124_s3 }
  0x1e   : > { %p470_p1 = scmp.ne.s32.totalorder %s124_s3, %s469_s5  ;;  %p478_p7 = scmp.lt.s32.totalorder %s469_s5, %s469_s5 }
  0x20   : > { %p472_p4 = pnand %p471_p2, %p470_p1  ;;  %p479_p9 = por %p478_p7, %p477_p6 }
  0x22   : > { %p473_p5 = pneg %p472_p4 }
  0x24   : > { %p480_p8 = pnand %p479_p9, %p473_p5 }
  0x26   : > { %483 = shalt.err (!%p480_p8)
}
  0x27   : > { %s584_s6 = smov [#allocation2]   ;;  %150 = sbr.rel (%p670_p10) target bundleno = 209 (0xd1), region = 28 }
  0x28   : > { %395 = dma.vmem_to_smem (!%p393_p0), %s124_s3, 16, %s584_s6, [#allocation4]  }
  0x2e   : > { %545 = dma.done.wait (%p674_p12), [#allocation4], 16  }
  0x2f   : > { %547 = vsyncadd (%p674_p12), [#allocation4], 4294967280 }
  0x30   : > { %156 = sfence }
  0x31   : > { %s373_s7 = sshll.u32 %s566_s12, 2  ;;  %p179_p11 = scmp.lt.s32.totalorder %s570_s13, 1  ;;  %vm254_vm0 = vcmask 64512  }
  0x32   : > { %p181_p13 = scmp.lt.s32.totalorder %s373_s7, 15  ;;  %s697_s8 = smul.u32 9, %s566_s12 }
  0x33   : > { %s180_s17 = scalar_select %p179_p11, %s570_s13, 1 }
  0x34   : > { %s805_s7 = smov (!%p181_p13, %s373_s7), 15  ;;  %s191_s21 = sld [smem:[#allocation2 + %s697_s8]] }
  0x35   : > { %s375_s18 = sshll.u32 %s180_s17, 5  ;;  %s374_s22 = sshll.u32 %s805_s7, 1 }
  0x36   : > { %s201_s25 = sadd.s32 2, %s697_s8  ;;  %s185_s26 = sadd.s32 %s375_s18, %s374_s22 }
  0x37   : > { %s202_s27 = sld [smem:[#allocation2 + %s201_s25]]  ;;  %s376_s28 = sshll.u32 %s185_s26, 3 }
  0x38   : > { %s789_s1 = sld [smem:[#allocation9_spill]]  ;;  %s224_s5 = sadd.s32 5, %s697_s8 }
  0x39   : > { %s225_s6 = sld [smem:[#allocation2 + %s224_s5]]  ;;  %s234_s0 = sadd.s32 6, %s697_s8 }
  0x3a   : > { %v192_v1 = vstv %s191_s21  ;;  %s235_s7 = sld [smem:[#allocation2 + %s234_s0]]  ;;  %s245_s17 = sadd.s32 8, %s697_s8 }
  0x3b   : > { %s246_s18 = sld [smem:[#allocation2 + %s245_s17]]  ;;  %s196_s22 = sadd.s32 1, %s697_s8 }
  0x3c   : > { %s197_s25 = sld [smem:[#allocation2 + %s196_s22]]  ;;  %s212_s26 = sadd.s32 3, %s697_s8 }
  0x3d   : > { %v203_v3 = vstv %s202_s27  ;;  %s219_s29 = sadd.s32 4, %s697_s8  ;;  %s240_s5 = sadd.s32 7, %s697_s8 }
  0x3e   : > { %s705_s3 = scalar_lea.vmem %s789_s1, %s376_s28  ;;  %s213_s28 = sld [smem:[#allocation2 + %s212_s26]] }
  0x3f   : > { %v189_v0 = vld [vmem:[%s705_s3] sm:$0xff]  ;;  %s220_s30 = sld [smem:[#allocation2 + %s219_s29]]  ;;  %s585_s1 = smov 127   ;;  %v226_v6 = vstv %s225_s6  ;;  %v377_v10 = vld [vmem:[%s705_s3 + $0x10] sm:$0xff] }
  0x40   : > { %v193_v2 = vadd.f32 %v192_v1, %v189_v0  ;;  %v204_v4 = vadd.f32 %v203_v3, %v189_v0  ;;  %v378_v5 = vld [vmem:[%s705_s3 + $0x20] sm:$0xff]  ;;  %s241_s0 = sld [smem:[#allocation2 + %s240_s5]]  ;;  %v236_v9 = vstv %s235_s7  ;;  %v379_v15 = vld [vmem:[%s705_s3 + $0x30] sm:$0xff]  ;;  %s175_s8 = sand.u32 1, %s558_s10  }
  0x41   : > { %v233_v7 = vld [vmem:[%s705_s3 + $0x1] sm:$0xff]  ;;  %v227_v8 = vadd.f32 %v378_v5, %v226_v6  ;;  %v247_v11 = vstv %s246_s18  ;;  %v380_v18 = vld [vmem:[%s705_s3 + $0x11] sm:$0xff]  ;;  %s372_s21 = sshll.u32 %s175_s8, 3  ;;  %s382_s27 = sshll.u32 %s570_s13, 2 }
  0x42   : > { %206 = vrot.lane.b32.xlu0 %v204_v4, %s585_s1  ;;  %v237_v12 = vadd.f32 %v236_v9, %v233_v7  ;;  %v248_v13 = vadd.f32 %v247_v11, %v233_v7  ;;  %v198_v14 = vstv %s197_s25  ;;  %s268_s6 = sadd.s32 %s566_s12, %s382_s27  ;;  %s177_s3 = scalar_lea.vmem [#allocation5], %s372_s21 }
  0x43   : > { %v199_v16 = vadd.f32 %v377_v10, %v198_v14  ;;  %s272_s7 = sshll.u32 %s177_s3, 4  ;;  %s257_s12 = scalar_lea.sflag [#allocation3], %s175_s8  ;;  %s728_s7 = int_to_ptr.vmem [resolvable:$true] %s272_s7 }
  0x44   : > { %v214_v17 = vstv %s213_s28  ;;  %250 = vrot.lane.b32.xlu1 %v248_v13, %s585_s1  ;;  %s484_s13 = scalar_lea.vmem %s728_s7, 128  ;;  %s586_s25 = smov [#allocation5]  }
  0x45   : > { %v215_v19 = vadd.f32 %v378_v5, %v214_v17  ;;  %v221_v20 = vstv %s220_s30  ;;  %v200_v21 = vmax.f32 %v193_v2, %v199_v16  ;;  %p485_p8 = scmp.ne.s32.totalorder %s728_s7, %s484_s13  ;;  %s488_s26 = sshll.u32 %s586_s25, 4  ;;  %s489_s26 = int_to_ptr.vmem [resolvable:$false] %s488_s26 }
  0x46   : > { %229 = vrot.lane.b32.xlu0 %v227_v8, %s585_s1  ;;  %v222_v22 = vadd.f32 %v379_v15, %v221_v20  ;;  %v242_v23 = vstv %s241_s0  ;;  %s383_s1 = sshll.u32 %s268_s6, 7  ;;  %s490_s28 = scalar_lea.vmem %s489_s26, 256 }
  0x47   : > { %v243_v24 = vadd.f32 %v380_v18, %v242_v23  ;;  %s726_s22 = scalar_lea.hbm %s781_s2, %s383_s1  ;;  %p486_p10 = pnand %p485_p8, %p654_p3 }
  0x48   : > { %p491_p0 = scmp.lt.s32.totalorder %s728_s7, %s489_s26  ;;  %p492_p1 = scmp.lt.s32.totalorder %s490_s28, %s484_s13 }
  0x49   : > { %p487_p12 = pneg %p486_p10 }
  0x4a   : > { %p493_p2 = por %p492_p1, %p491_p0 }
  0x4c   : > { %p494_p4 = pnand %p493_p2, %p487_p12 }
  0xb4   : > { %v207_v25 = vpop.permute.xlu0 %206 }
  0xb5   : > { %v209_v26 = vmax.f32 %v200_v21, %v207_v25 }
  0xb6   : > { %v251_v32 = vpop.permute.xlu1 %250 }
  0xb7   : > { %v216_v27 = vmax.f32 %v209_v26, %v215_v19 }
  0xb8   : > { %v230_v28 = vpop.permute.xlu0 %229 }
  0xb9   : > { %v223_v29 = vmax.f32 %v216_v27, %v222_v22 }
  0xbb   : > { %v232_v30 = vmax.f32 %v223_v29, %v230_v28 }
  0xbd   : > { %v238_v31 = vmax.f32 %v232_v30, %v237_v12 }
  0xbf   : > { %v244_v33 = vmax.f32 %v238_v31, %v243_v24 }
  0xc1   : > { %v253_v34 = vmax.f32 %v244_v33, %v251_v32 }
  0xc3   : > { %255 = vst.msk [vmem:[%s177_s3] sm:$0xff] %vm254_vm0, %v253_v34 }
  0xc4   : > { %497 = shalt.err (!%p494_p4)
}
  0xc5   : > { %s498_s29 = scalar_lea.hbm %s726_s22, 128  ;;  %s502_s0 = scalar_lea.hbm %s781_s2, 1024 }
  0xc6   : > { %p499_p5 = scmp.ne.s32.totalorder %s726_s22, %s498_s29  ;;  %p503_p9 = scmp.lt.u32.totalorder %s726_s22, %s781_s2 }
  0xc7   : > { %p504_p11 = scmp.lt.u32.totalorder %s502_s0, %s498_s29  ;;  %p506_p8 = scmp.lt.u32.totalorder %s498_s29, %s726_s22 }
  0xc8   : > { %p500_p6 = pnand %p499_p5, %p654_p3 }
  0xc9   : > { %p505_p13 = por %p504_p11, %p503_p9 }
  0xca   : > { %p501_p7 = pneg %p500_p6 }
  0xcb   : > { %p507_p10 = por %p506_p8, %p505_p13 }
  0xcd   : > { %p508_p12 = pnand %p507_p10, %p501_p7 }
  0xcf   : > { %511 = shalt.err (!%p508_p12)
}
  0xd0   : > { %390 = dma.vmem_to_hbm [thread:$0]  (%p654_p3), %s728_s7, 128, %s726_s22, %s257_s12  }
  0xd1 PF: > { %p402_p0 = scmp.ge.s32.totalorder %s582_s16, 2  ;;  %s284_s27 = sand.u32 1, %s554_s9  }
  0xd2   : > { %p790_p1 = scmp.ne.s32.totalorder %s785_s24, 0  ;;  %s285_s6 = scalar_lea.sflag [#allocation3], %s284_s27 }
  0xd4   : > { %p397_p2 = pnand %p402_p0, %p790_p1 }
  0xd6   : > { %549 = dma.done.wait (!%p397_p2), %s285_s6, 128  }
  0xd7   : > { %551 = vsyncadd (!%p397_p2), %s285_s6, 4294967168  ;;  %s16_s16 = sadd.s32 1, %s582_s16   ;;  %s791_s9 = smov %s558_s10 }
  0xd8   : > { %p13_p4 = scmp.ge.s32.totalorder %s16_s16, 10   ;;  %s792_s10 = smov %s562_s11 }
  0xd9   : > { %s793_s11 = smov %s684_s4  ;;  %s794_s12 = smov %s574_s14 }
  0xda   : > { %s795_s13 = smov %s578_s15  ;;  %s796_s14 = smov %s799_s19 }
  0xdb   : > { %s797_s15 = smov %s803_s20  ;;  %15 = sbr.rel (!%p13_p4) target bundleno = 9 (0x9), region = 71 }
  0xe2   :  { %290 = vsyncpa [#allocation3], 1 }
  0xe3   :  { %292 = vsyncpa [#allocation3 + $0x1], 1 }
  0xe4   :  { %293 = vsyncpa [#allocation4], 1 }
  0xe5   :  { %295 = vsyncpa [#allocation4 + $0x1], 1 }

</bundles_post_ra>
